<compile_context>
chip_gen: v6e
topology: v6e:2x2x1
jax: 0.10.0
libtpu: 0.0.40
codegen_flags: <defaults>
</compile_context>

<pallas_src>
import functools
import math

import jax
import jax.numpy as jnp
from jax.experimental import pallas as pl
from jax.experimental.pallas import tpu as pltpu


def _invert(perm):
    inv = [0] * len(perm)
    for i, p in enumerate(perm):
        inv[p] = i
    return tuple(inv)


def _make_lane_shuffle_kernel(perm, F, L):
    """Kernel over (tr, L) lane-dense tiles of the flat buffer.

    For lane j with j % F == i:  out[., j] = x[., j - i + perm[i]],
    i.e. an F-periodic lane shuffle.  Implemented as one pltpu.roll per
    distinct shift plus lane-mask selects (pure XLU/VPU filler, hidden
    under the DMAs).
    """
    # Group feature slots by their static lane shift.
    shift_to_feats = {}
    for i, p in enumerate(perm):
        s = (i - p) % L          # rolled[j] = x[j - s]  ->  x[j - i + perm[i]]
        if s == 0:
            continue             # identity slot: keep x
        shift_to_feats.setdefault(s, []).append(i)

    def kernel(x_ref, o_ref):
        x = x_ref[...]
        fidx = jax.lax.broadcasted_iota(jnp.int32, x.shape, 1) % F
        out = x                                  # covers identity slots
        for s, feats in shift_to_feats.items():
            rolled = pltpu.roll(x, shift=s, axis=1)
            mask = functools.reduce(jnp.logical_or,
                                    [fidx == i for i in feats])
            out = jnp.where(mask, rolled, out)
        o_ref[...] = out

    return kernel


def permutation_forward(x, perm, *, inverse=False, target_block_bytes=1 << 20):
    """Apply the feature permutation: out = x[:, perm] (or inv_perm).

    x:    (B, F) array, batch-major (same interface as the nn.Module).
    perm: concrete integer sequence of length F (module buffer, static).
    """
    B, F = x.shape
    perm = tuple(int(p) for p in perm)
    assert sorted(perm) == list(range(F)), "perm must be a permutation of 0..F-1"
    if inverse:
        perm = _invert(perm)
    if perm == tuple(range(F)):
        return x

    itemsize = jnp.dtype(x.dtype).itemsize
    N = B * F
    L = (F * 128) // math.gcd(F, 128)            # lcm(F, 128): lane-dense rows
    cost = pl.CostEstimate(flops=0, transcendentals=0,
                           bytes_accessed=2 * N * itemsize)

    # Flat, lane-dense view of the row-major buffer (free reshape; padding of
    # the flat tail only in the rare case L does not divide B*F).
    Np = pl.cdiv(N, L) * L
    xf = x.reshape(-1)
    if Np != N:
        xf = jnp.pad(xf, (0, Np - N))
    R = Np // L
    xf = xf.reshape(R, L)

    # Batch-of-rows tile: ~target_block_bytes per direction per step,
    # sublane-aligned (multiple of 8) unless it spans the whole array.
    tr = max(8, (target_block_bytes // (L * itemsize)) // 8 * 8)
    tr = min(tr, R)
    if pl.cdiv(R, tr) == 1 and R >= 16:
        # Give both v7x TensorCores work (even split, still 8-aligned).
        tr = ((R + 15) // 16) * 8
    n_blocks = pl.cdiv(R, tr)

    out = pl.pallas_call(
        _make_lane_shuffle_kernel(perm, F, L),
        out_shape=jax.ShapeDtypeStruct((R, L), x.dtype),
        grid=(n_blocks,),
        in_specs=[pl.BlockSpec((tr, L), lambda i: (i, 0))],
        out_specs=pl.BlockSpec((tr, L), lambda i: (i, 0)),
        compiler_params=pltpu.CompilerParams(
            dimension_semantics=("parallel",)),   # 2-TC split on v7x
        cost_estimate=cost,
    )(xf)

    return out.reshape(-1)[:N].reshape(B, F)


if __name__ == "__main__":
    key = jax.random.PRNGKey(0)
    k_x, k_p, k_x2 = jax.random.split(key, 3)

    # --- main case: exercises the no-pad fast path (B*F multiple of 128) ---
    num_features = 4
    batch = 256
    x = jax.random.normal(k_x, (batch, num_features), jnp.float32)
    perm = jax.random.permutation(k_p, num_features)   # torch.randperm analogue

    out = jax.block_until_ready(permutation_forward(x, perm, inverse=False))
    ref = x[:, perm]
    assert out.shape == x.shape
    assert bool(jnp.array_equal(out, ref))

    # inverse(forward(x)) == x exactly (log|det| = 0)
    back = jax.block_until_ready(permutation_forward(out, perm, inverse=True))
    assert bool(jnp.array_equal(back, x))

    # --- ragged case: exercises the flat-pad branch (B*F not multiple of L) ---
    x2 = jax.random.normal(k_x2, (50, num_features), jnp.float32)
    out2 = jax.block_until_ready(permutation_forward(x2, perm))
    assert bool(jnp.array_equal(out2, x2[:, perm]))
    back2 = jax.block_until_ready(permutation_forward(out2, perm, inverse=True))
    assert bool(jnp.array_equal(back2, x2))

    print("KERNEL_OK")
</pallas_src>

<mosaic_0001>
module attributes {stable_mosaic.version = 11 : i64} {
  func.func @kernel(%arg0: i32, %arg1: memref<8x128xf32, #tpu.memory_space<vmem>>, %arg2: memref<8x128xf32, #tpu.memory_space<vmem>>) attributes {dimension_semantics = [#tpu.dimension_semantics<parallel>], iteration_bounds = array<i64: 1>, scalar_prefetch = 0 : i64, scratch_operands = 0 : i64, tpu.core_type = #tpu.core_type<tc>, window_params = [{transform_indices = @transform_0, window_bounds = array<i64: 8, 128>}, {transform_indices = @transform_1, window_bounds = array<i64: 8, 128>}]} {
    %c0 = arith.constant 0 : index
    %c0_0 = arith.constant 0 : index
    %0 = vector.load %arg1[%c0, %c0_0] : memref<8x128xf32, #tpu.memory_space<vmem>>, vector<8x128xf32>
    %1 = tpu.iota {dimensions = array<i32: 1>} : vector<8x128xi32>
    %c4_i32 = arith.constant 4 : i32
    %c0_i32 = arith.constant 0 : i32
    %2 = arith.cmpi eq, %c4_i32, %c0_i32 : i32
    %c1_i32 = arith.constant 1 : i32
    %3 = arith.select %2, %c1_i32, %c4_i32 : i32
    %4 = vector.broadcast %3 : i32 to vector<8x128xi32>
    %5 = arith.remsi %1, %4 : vector<8x128xi32>
    %c0_i32_1 = arith.constant 0 : i32
    %6 = vector.broadcast %c0_i32_1 : i32 to vector<8x128xi32>
    %7 = arith.cmpi ne, %5, %6 : vector<8x128xi32>
    %c0_i32_2 = arith.constant 0 : i32
    %8 = vector.broadcast %c0_i32_2 : i32 to vector<8x128xi32>
    %9 = arith.cmpi slt, %5, %8 : vector<8x128xi32>
    %c0_i32_3 = arith.constant 0 : i32
    %10 = arith.cmpi slt, %3, %c0_i32_3 : i32
    %11 = vector.broadcast %10 : i1 to vector<8x128xi1>
    %12 = vector.broadcast %11 : vector<8x128xi1> to vector<8x128xi1>
    %13 = arith.xori %9, %12 : vector<8x128xi1>
    %14 = arith.andi %13, %7 : vector<8x128xi1>
    %15 = vector.broadcast %3 : i32 to vector<8x128xi32>
    %16 = arith.addi %5, %15 : vector<8x128xi32>
    %17 = arith.select %14, %16, %5 : vector<8x128xi1>, vector<8x128xi32>
    %c126_i32 = arith.constant 126 : i32
    %18 = tpu.dynamic_rotate %0 by %c126_i32 dim 1 : vector<8x128xf32>, i32 -> vector<8x128xf32>
    %c1_i32_4 = arith.constant 1 : i32
    %19 = vector.broadcast %c1_i32_4 : i32 to vector<8x128xi32>
    %20 = arith.cmpi eq, %17, %19 : vector<8x128xi32>
    %21 = arith.select %20, %18, %0 : vector<8x128xi1>, vector<8x128xf32>
    %c1_i32_5 = arith.constant 1 : i32
    %22 = tpu.dynamic_rotate %0 by %c1_i32_5 dim 1 : vector<8x128xf32>, i32 -> vector<8x128xf32>
    %c2_i32 = arith.constant 2 : i32
    %23 = vector.broadcast %c2_i32 : i32 to vector<8x128xi32>
    %24 = arith.cmpi eq, %17, %23 : vector<8x128xi32>
    %c3_i32 = arith.constant 3 : i32
    %25 = vector.broadcast %c3_i32 : i32 to vector<8x128xi32>
    %26 = arith.cmpi eq, %17, %25 : vector<8x128xi32>
    %27 = arith.ori %24, %26 : vector<8x128xi1>
    %28 = arith.select %27, %22, %21 : vector<8x128xi1>, vector<8x128xf32>
    %c0_6 = arith.constant 0 : index
    %c0_7 = arith.constant 0 : index
    %29 = vector.load %arg2[%c0_6, %c0_7] : memref<8x128xf32, #tpu.memory_space<vmem>>, vector<8x128xf32>
    tpu.vector_store %arg2[%c0_6, %c0_7], %28 {strides = array<i32>} : memref<8x128xf32, #tpu.memory_space<vmem>>, vector<8x128xf32>,
    return
  }
  func.func @transform_0(%arg0: i32) -> (i32, i32) {
    %c0_i32 = arith.constant 0 : i32
    %c0_i32_0 = arith.constant 0 : i32
    return %arg0, %c0_i32 : i32, i32
  }
  func.func @transform_1(%arg0: i32) -> (i32, i32) {
    %c0_i32 = arith.constant 0 : i32
    %c0_i32_0 = arith.constant 0 : i32
    return %arg0, %c0_i32 : i32, i32
  }
}

</mosaic_0001>

<bundles_post_ra>
// kernel: tpu_custom_call.1
= control target key start
LH: loop header
LB: loop body
LE: loop exit
PB: predicated region body
PF: predicated region fallthrough
CT: control target
= control target key end

     0   :  { %6 = vsyncpa [#allocation3], 0  ;;  %s130_s0 = inlined_call_operand.hbm [shape: f32[8,128], index: 0, kind: input, shape index: {}]   ;;  %s131_s1 = inlined_call_operand.hbm [shape: f32[8,128], index: 1, kind: output, shape index: {}]  }
   0x1   :  { %7 = vsyncpa [#allocation4], 0  ;;  %s110_s6 = smov [#allocation2]  }
   0x2   :  { %s14_s7 = sshll.u32 %s110_s6, 4  ;;  %s15_s7 = int_to_ptr.vmem [resolvable:$true] %s14_s7 }
   0x3   :  { %s74_s8 = scalar_lea.vmem %s15_s7, 128  ;;  %p79_p1 = scmp.lt.s32.totalorder %s15_s7, %s15_s7 }
   0x4   :  { %p75_p0 = scmp.ne.s32.totalorder %s15_s7, %s74_s8  ;;  %p80_p2 = scmp.lt.s32.totalorder %s74_s8, %s74_s8 }
   0x6   :  { %p81_p3 = por %p80_p2, %p79_p1 }
   0x8   :  { %p82_p4 = pnand %p81_p3, %p75_p0 }
   0xa   :  { %85 = shalt.err (!%p82_p4)
}
   0xb   :  { %17 = dma.hbm_to_vmem [thread:$0]  %s130_s0, 128, %s15_s7, [#allocation3]  }
   0xc   :  { %106 = dma.done.wait [#allocation3], 128  }
   0xd   :  { %107 = vsyncadd [#allocation3], 4294967168  ;;  %v21_v0 = vld [vmem:[#allocation2] sm:$0xff]  ;;  %s111_s11 = smov 126   ;;  %s112_s12 = smov 1   ;;  %v22_v1 = vlaneseq }
   0xe   :  { %36 = vrot.lane.b32.xlu0 %v21_v0, %s111_s11  ;;  %s113_s13 = smov [#allocation5]  }
   0xf   :  { %v23_v2 = vand.u32 127, %v22_v1  ;;  %s53_s14 = sshll.u32 %s113_s13, 4  ;;  %s54_s14 = int_to_ptr.vmem [resolvable:$true] %s53_s14 }
  0x10   :  { %s86_s0 = scalar_lea.vmem %s54_s14, 128  ;;  %p91_p6 = scmp.lt.s32.totalorder %s54_s14, %s54_s14 }
  0x11   :  { %v28_v3 = vand.u32 3, %v23_v2  ;;  %p87_p5 = scmp.ne.s32.totalorder %s54_s14, %s86_s0  ;;  %p92_p7 = scmp.lt.s32.totalorder %s86_s0, %s86_s0 }
  0x12   :  { %40 = vrot.lane.b32.xlu0 %v21_v0, %s112_s12 }
  0x13   :  { %vm42_vm0 = vcmp.eq.s32.totalorder %v28_v3, 2  ;;  %vm43_vm1 = vcmp.eq.s32.totalorder %v28_v3, 3  ;;  %vm38_vm2 = vcmp.eq.s32.totalorder %v28_v3, 1  ;;  %p93_p8 = por %p92_p7, %p91_p6 }
  0x14   :  { %vm44_vm3 = vmor %vm42_vm0, %vm43_vm1 }
  0x15   :  { %p94_p9 = pnand %p93_p8, %p87_p5 }
  0x80   :  { %v37_v4 = vpop.permute.xlu0 %36 }
  0x81   :  { %v39_v5 = vsel %vm38_vm2, %v37_v4, %v21_v0 }
  0x84   :  { %v41_v6 = vpop.permute.xlu0 %40 }
  0x85   :  { %v45_v7 = vsel %vm44_vm3, %v41_v6, %v39_v5 }
  0x86   :  { %46 = vst [vmem:[#allocation5] sm:$0xff] %v45_v7 }
  0x87   :  { %97 = shalt.err (!%p94_p9)
}
  0x88   :  { %56 = dma.vmem_to_hbm [thread:$0]  %s54_s14, 128, %s131_s1, [#allocation4]  }
  0x89   :  { %108 = dma.done.wait [#allocation4], 128  }
  0x8a   :  { %109 = vsyncadd [#allocation4], 4294967168 }
  0x8b   :  { %60 = vsyncpa [#allocation3], 1 }
  0x8c   :  { %61 = vsyncpa [#allocation4], 1 }

</bundles_post_ra>
